<compile_context>
chip_gen: v7x
topology: tpu7x:2x2x1
jax: 0.10.0
libtpu: 0.0.40
codegen_flags: <defaults>
</compile_context>

<pallas_src>
import functools

import jax
import jax.numpy as jnp
from jax import lax
from jax.experimental import pallas as pl
from jax.experimental.pallas import tpu as pltpu

BN_EPS = 1e-5                      # PyTorch nn.BatchNorm2d default eps


def _vmem_budget_bytes():
    """Per-generation VMEM budget: ~3/4 of physical per-core VMEM (48 MiB on v7x,
    96 MiB on v5e/v6e), so double-buffering + compiler temporaries keep headroom."""
    try:
        cap = int(pltpu.get_tpu_info().vmem_capacity_bytes)
    except Exception:
        cap = 64 * 1024 * 1024
    return (cap * 3) // 4


def _pick_hw_tile(hw, bytes_per_lane, budget_bytes):
    """Largest 128-aligned divisor of hw (or hw itself) whose working set fits the
    VMEM budget.  If nothing fits, return the smallest legal tile instead of silently
    using the whole image."""
    cands = [t for t in range(128, hw, 128) if hw % t == 0] + [hw]
    fitting = [t for t in cands if t * bytes_per_lane <= budget_bytes]
    if fitting:
        return max(fitting)
    # TODO(synk): row tiling ((8*k, W) blocks on a 4-D view) for huge Cin*HW inputs.
    return min(cands)


# ---------------------------------------------------------------------------------------
# Kernel 1: BN1 batch statistics (per-feature, per-(image, spatial-tile) partial sums).
# ---------------------------------------------------------------------------------------
def _bn_stats_kernel(*refs, num_feats):
    feat_refs = refs[:num_feats]
    sum_refs = refs[num_feats:2 * num_feats]
    sq_refs = refs[2 * num_feats:]
    for f_ref, s_ref, q_ref in zip(feat_refs, sum_refs, sq_refs):
        x = f_ref[0]                                            # (c_i, hw_tile) f32
        s_ref[0, 0] = jnp.sum(x, axis=1, keepdims=True)         # (c_i, 1)
        q_ref[0, 0] = jnp.sum(x * x, axis=1, keepdims=True)     # E[x^2] form (clamped later)


# ---------------------------------------------------------------------------------------
# Kernel 2: BN1 apply + ReLU + 1x1 conv (concat fused away: per-feature matmuls summed),
#           emitting bf16 z and BN2 partial statistics from the f32 accumulator.
# ---------------------------------------------------------------------------------------
def _bottleneck_kernel(*refs, num_feats, use_bf16):
    feat_refs = refs[:num_feats]
    scale_refs = refs[num_feats:2 * num_feats]
    bias_refs = refs[2 * num_feats:3 * num_feats]
    w_refs = refs[3 * num_feats:4 * num_feats]
    z_ref, zsum_ref, zsq_ref = refs[4 * num_feats:]

    acc = None
    for f_ref, s_ref, b_ref, w_ref in zip(feat_refs, scale_refs, bias_refs, w_refs):
        x = f_ref[0]                                            # (c_i, hw_tile)
        a = jnp.maximum(x * s_ref[...] + b_ref[...], 0.0)       # BN1 + ReLU (f32 VPU)
        w = w_ref[...]                                          # (Cmid, c_i)
        if use_bf16:                                            # bf16 in, f32 acc on MXU
            a = a.astype(jnp.bfloat16)
            w = w.astype(jnp.bfloat16)
        d = jnp.dot(w, a, preferred_element_type=jnp.float32)   # (Cmid, hw_tile)
        acc = d if acc is None else acc + d

    z_ref[0] = acc.astype(z_ref.dtype)                          # bf16 z -> half HBM traffic
    # BN2 partial statistics from the f32 accumulator (before the bf16 cast).
    zsum_ref[0, 0] = jnp.sum(acc, axis=1, keepdims=True)
    zsq_ref[0, 0] = jnp.sum(acc * acc, axis=1, keepdims=True)


# ---------------------------------------------------------------------------------------
# Kernel 3: fused BN2 apply + ReLU + 3x3 conv (padding=1 via masks, no im2col slab).
# ---------------------------------------------------------------------------------------
def _conv3x3_kernel(z_ref, scale2_ref, bias2_ref, w2_ref, o_ref, *, W, use_bf16):
    _, Cmid, HW = z_ref.shape
    H = HW // W
    z = z_ref[0].astype(jnp.float32)                            # (Cmid, H*W), bf16 -> f32
    a = jnp.maximum(z * scale2_ref[...] + bias2_ref[...], 0.0)  # fused BN2 + ReLU

    # Boundary masks built once from a (1, HW) iota (one divide, four compares total;
    # no per-tap (Cmid, HW) integer work).
    lane = lax.broadcasted_iota(jnp.int32, (1, HW), 1)
    h_idx = lane // W
    w_idx = lane - h_idx * W
    row_ok = {-1: h_idx >= 1, 0: None, 1: h_idx < H - 1}
    col_ok = {-1: w_idx >= 1, 0: None, 1: w_idx < W - 1}

    def tap_mask(oh, ow):
        m = None
        for mm in (row_ok[oh], col_ok[ow]):
            if mm is not None:
                m = mm if m is None else (m & mm)
        return None if m is None else m.astype(a.dtype)         # (1, HW), broadcasts over Cmid

    acc = None
    for di in range(3):
        for dj in range(3):
            oh, ow = di - 1, dj - 1
            s = oh * W + ow                                     # flat spatial offset of tap
            # shifted[:, h*W+w] == a[:, (h+oh)*W + (w+ow)]; out-of-image taps masked to 0,
            # which implements conv padding=1 without a padded tensor or im2col slab.
            shifted = a if s == 0 else pltpu.roll(a, shift=(-s) % HW, axis=1)
            m = tap_mask(oh, ow)
            tap = shifted if m is None else shifted * m
            w_t = w2_ref[di * 3 + dj]                           # (G, Cmid)
            if use_bf16:
                tap = tap.astype(jnp.bfloat16)
                w_t = w_t.astype(jnp.bfloat16)
            d = jnp.dot(w_t, tap, preferred_element_type=jnp.float32)   # (G, HW) on MXU
            acc = d if acc is None else acc + d
    o_ref[0] = acc
    # TODO(synk): for very large H*W / small batch on v7x, additionally tile this pass
    # over output rows with a 1-row halo (grid (N, n_row_tiles)) to add pipeline depth.


def _bn_scale_bias(total, total_sq, count, gamma, beta):
    """Fold training-mode batch statistics into per-channel scale/bias (tiny f32 glue)."""
    mean = total / count
    var = jnp.maximum(total_sq / count - mean * mean, 0.0)      # clamp E[x^2]-mean^2 noise
    scale = gamma * lax.rsqrt(var + BN_EPS)
    bias = beta - mean * scale
    return scale.reshape(-1, 1), bias.reshape(-1, 1)            # (C, 1) for lane broadcast


def dense_layer_forward(prev_features, params, drop_rate=0.0, training=True,
                        use_bf16_matmul=True):
    """Equivalent of _DenseLayer.forward(*prev_features).  Inputs / outputs are NCHW.
    params: g1,b1,g2,b2 per-channel BN params; w1 (Cmid, Cin); w2 (9, G, Cmid) tap-major."""
    feats = [jnp.asarray(f, jnp.float32) for f in prev_features]
    N, _, H, W = feats[0].shape
    HW = H * W
    c_list = [int(f.shape[1]) for f in feats]
    Cin = sum(c_list)
    F = len(feats)
    Cmid = params["w1"].shape[0]
    G = params["w2"].shape[1]

    budget = _vmem_budget_bytes()
    # Rough per-lane working-set bytes for pass 2 (double-buffered inputs/outputs + temps).
    hw_tile = _pick_hw_tile(HW, 16 * (Cin + Cmid), budget // 2)
    n_hw = HW // hw_tile

    # Channel-major (N, C, H*W) view; spatial lands on lanes, reshape is free.
    feats3 = [f.reshape(N, c, HW) for f, c in zip(feats, c_list)]

    cp2 = pltpu.CompilerParams(dimension_semantics=("parallel", "parallel"),
                               vmem_limit_bytes=budget)

    # ---- Pass 1: BN1 batch statistics (per-feature partial sums; tiny finalize in XLA). ----
    stats = pl.pallas_call(
        functools.partial(_bn_stats_kernel, num_feats=F),
        out_shape=tuple(jax.ShapeDtypeStruct((N, n_hw, c, 1), jnp.float32) for c in c_list) * 2,
        grid=(N, n_hw),
        in_specs=[pl.BlockSpec((1, c, hw_tile), lambda i, j: (i, 0, j)) for c in c_list],
        out_specs=tuple(pl.BlockSpec((1, 1, c, 1), lambda i, j: (i, j, 0, 0)) for c in c_list) * 2,
        compiler_params=cp2,
    )(*feats3)
    s_list, q_list = stats[:F], stats[F:]
    total = jnp.concatenate([jnp.sum(s, axis=(0, 1))[:, 0] for s in s_list])
    total_sq = jnp.concatenate([jnp.sum(q, axis=(0, 1))[:, 0] for q in q_list])
    scale1, bias1 = _bn_scale_bias(total, total_sq, float(N * HW), params["g1"], params["b1"])

    # Split BN1 scale/bias and the 1x1 weights per feature (tiny XLA slices; the big
    # activation concat never touches HBM).
    offs = [0]
    for c in c_list:
        offs.append(offs[-1] + c)
    scale1_list = [scale1[offs[i]:offs[i + 1]] for i in range(F)]
    bias1_list = [bias1[offs[i]:offs[i + 1]] for i in range(F)]
    w1_list = [params["w1"][:, offs[i]:offs[i + 1]] for i in range(F)]

    # ---- Pass 2: BN1 apply + ReLU + 1x1 conv, tiled over (image, spatial tile). ----
    z, zsum, zsq = pl.pallas_call(
        functools.partial(_bottleneck_kernel, num_feats=F, use_bf16=use_bf16_matmul),
        out_shape=(jax.ShapeDtypeStruct((N, Cmid, HW), jnp.bfloat16),
                   jax.ShapeDtypeStruct((N, n_hw, Cmid, 1), jnp.float32),
                   jax.ShapeDtypeStruct((N, n_hw, Cmid, 1), jnp.float32)),
        grid=(N, n_hw),
        in_specs=(
            [pl.BlockSpec((1, c, hw_tile), lambda i, j: (i, 0, j)) for c in c_list]
            + [pl.BlockSpec((c, 1), lambda i, j: (0, 0)) for c in c_list]        # scale1_i
            + [pl.BlockSpec((c, 1), lambda i, j: (0, 0)) for c in c_list]        # bias1_i
            + [pl.BlockSpec((Cmid, c), lambda i, j: (0, 0)) for c in c_list]     # w1_i
        ),
        out_specs=(
            pl.BlockSpec((1, Cmid, hw_tile), lambda i, j: (i, 0, j)),
            pl.BlockSpec((1, 1, Cmid, 1), lambda i, j: (i, j, 0, 0)),
            pl.BlockSpec((1, 1, Cmid, 1), lambda i, j: (i, j, 0, 0)),
        ),
        compiler_params=cp2,
    )(*feats3, *scale1_list, *bias1_list, *w1_list)
    scale2, bias2 = _bn_scale_bias(jnp.sum(zsum, axis=(0, 1))[:, 0],
                                   jnp.sum(zsq, axis=(0, 1))[:, 0],
                                   float(N * HW), params["g2"], params["b2"])

    # ---- Pass 3: fused BN2 + ReLU + 3x3 conv (one image per grid step, parallel). ----
    out = pl.pallas_call(
        functools.partial(_conv3x3_kernel, W=W, use_bf16=use_bf16_matmul),
        out_shape=jax.ShapeDtypeStruct((N, G, HW), jnp.float32),
        grid=(N,),
        in_specs=[
            pl.BlockSpec((1, Cmid, HW), lambda i: (i, 0, 0)),
            pl.BlockSpec((Cmid, 1), lambda i: (0, 0)),
            pl.BlockSpec((Cmid, 1), lambda i: (0, 0)),
            pl.BlockSpec((9, G, Cmid), lambda i: (0, 0, 0)),
        ],
        out_specs=pl.BlockSpec((1, G, HW), lambda i: (i, 0, 0)),
        compiler_params=pltpu.CompilerParams(dimension_semantics=("parallel",),
                                             vmem_limit_bytes=budget),
    )(z, scale2, bias2, params["w2"])

    new_features = out.reshape(N, G, H, W)                      # already NCHW; free reshape

    if drop_rate > 0 and training:
        # TODO(synk): training-mode dropout RNG (pltpu.prng_*) not implemented; example uses drop_rate=0.
        raise NotImplementedError("dropout with drop_rate>0 in training mode")
    return new_features


def ref_forward(prev_features, p):
    """Pure-JAX reference matching the PyTorch module (training-mode BN, no dropout)."""
    x = jnp.concatenate(prev_features, axis=1)

    def bn(t, g, b):
        mean = jnp.mean(t, axis=(0, 2, 3), keepdims=True)
        var = jnp.var(t, axis=(0, 2, 3), keepdims=True)
        return (t - mean) * lax.rsqrt(var + BN_EPS) * g.reshape(1, -1, 1, 1) \
            + b.reshape(1, -1, 1, 1)

    a = jnp.maximum(bn(x, p["g1"], p["b1"]), 0.0)
    z = lax.conv_general_dilated(a, p["w1_oihw"], (1, 1), "VALID",
                                 dimension_numbers=("NCHW", "OIHW", "NCHW"),
                                 precision=lax.Precision.HIGHEST)
    a2 = jnp.maximum(bn(z, p["g2"], p["b2"]), 0.0)
    out = lax.conv_general_dilated(a2, p["w2_oihw"], (1, 1), ((1, 1), (1, 1)),
                                   dimension_numbers=("NCHW", "OIHW", "NCHW"),
                                   precision=lax.Precision.HIGHEST)
    return out


if __name__ == "__main__":
    key = jax.random.PRNGKey(0)
    N, H, W = 2, 16, 16
    growth_rate, bn_size = 4, 4
    c0, c1 = 4, 4                                   # two prev_features, 4 channels each
    num_input_features = c0 + c1                    # = 8 after (fused) torch.cat
    Cmid = bn_size * growth_rate                    # = 16

    keys = jax.random.split(key, 8)
    f0 = jax.random.normal(keys[0], (N, c0, H, W), jnp.float32)
    f1 = jax.random.normal(keys[1], (N, c1, H, W), jnp.float32)

    # Deterministic synthetic parameters (PyTorch shapes: conv1 OIHW (Cmid,Cin,1,1),
    # conv2 OIHW (G,Cmid,3,3); BN weight/bias per channel).
    w1_oihw = jax.random.normal(keys[2], (Cmid, num_input_features, 1, 1),
                                jnp.float32) * (2.0 / num_input_features) ** 0.5
    w2_oihw = jax.random.normal(keys[3], (growth_rate, Cmid, 3, 3),
                                jnp.float32) * (2.0 / (Cmid * 9)) ** 0.5
    g1 = jax.random.uniform(keys[4], (num_input_features,), jnp.float32, 0.5, 1.5)
    b1 = jax.random.normal(keys[5], (num_input_features,), jnp.float32) * 0.1
    g2 = jax.random.uniform(keys[6], (Cmid,), jnp.float32, 0.5, 1.5)
    b2 = jax.random.normal(keys[7], (Cmid,), jnp.float32) * 0.1

    params = dict(
        g1=g1, b1=b1, g2=g2, b2=b2,
        w1=w1_oihw[:, :, 0, 0],                                            # (Cmid, Cin)
        # 3x3 weights packed tap-major: w2[t, g, c] == w2_oihw[g, c, di, dj], t = di*3+dj.
        w2=jnp.transpose(w2_oihw, (2, 3, 0, 1)).reshape(9, growth_rate, Cmid),
    )

    out = dense_layer_forward([f0, f1], params, drop_rate=0.0, use_bf16_matmul=True)
    out = jax.block_until_ready(out)

    ref = ref_forward([f0, f1], dict(g1=g1, b1=b1, g2=g2, b2=b2,
                                     w1_oihw=w1_oihw, w2_oihw=w2_oihw))
    assert out.shape == (N, growth_rate, H, W), out.shape
    max_err = float(jnp.max(jnp.abs(out - ref)))
    # bf16 matmuls + bf16 z intermediate -> looser tolerance than a pure-f32 path.
    assert jnp.allclose(out, ref, rtol=1e-1, atol=1e-1), f"max abs err = {max_err}"
    print("KERNEL_OK")
</pallas_src>

<mosaic_0001>
module attributes {stable_mosaic.version = 11 : i64} {
  func.func @_bn_stats_kernel(%arg0: i32, %arg1: i32, %arg2: memref<1x4x256xf32, #tpu.memory_space<vmem>>, %arg3: memref<1x4x256xf32, #tpu.memory_space<vmem>>, %arg4: memref<1x1x4x1xf32, #tpu.memory_space<vmem>>, %arg5: memref<1x1x4x1xf32, #tpu.memory_space<vmem>>, %arg6: memref<1x1x4x1xf32, #tpu.memory_space<vmem>>, %arg7: memref<1x1x4x1xf32, #tpu.memory_space<vmem>>) attributes {dimension_semantics = [#tpu.dimension_semantics<parallel>, #tpu.dimension_semantics<parallel>], iteration_bounds = array<i64: 2, 1>, scalar_prefetch = 0 : i64, scratch_operands = 0 : i64, tpu.core_type = #tpu.core_type<tc>, window_params = [{transform_indices = @transform_0, window_bounds = array<i64: 1, 4, 256>}, {transform_indices = @transform_1, window_bounds = array<i64: 1, 4, 256>}, {transform_indices = @transform_2, window_bounds = array<i64: 1, 1, 4, 1>}, {transform_indices = @transform_3, window_bounds = array<i64: 1, 1, 4, 1>}, {transform_indices = @transform_4, window_bounds = array<i64: 1, 1, 4, 1>}, {transform_indices = @transform_5, window_bounds = array<i64: 1, 1, 4, 1>}]} {
    %c0 = arith.constant 0 : index
    %c0_0 = arith.constant 0 : index
    %c0_1 = arith.constant 0 : index
    %0 = vector.load %arg2[%c0, %c0_0, %c0_1] : memref<1x4x256xf32, #tpu.memory_space<vmem>>, vector<1x4x256xf32>
    %1 = vector.shape_cast %0 : vector<1x4x256xf32> to vector<4x256xf32>
    %cst = arith.constant dense<0.000000e+00> : vector<4xf32>
    %2 = vector.multi_reduction <add>, %1, %cst [1] : vector<4x256xf32> to vector<4xf32>
    %3 = vector.shape_cast %2 : vector<4xf32> to vector<4x1xf32>
    %c0_2 = arith.constant 0 : index
    %c0_3 = arith.constant 0 : index
    %c0_4 = arith.constant 0 : index
    %c0_5 = arith.constant 0 : index
    %4 = vector.load %arg4[%c0_2, %c0_3, %c0_4, %c0_5] : memref<1x1x4x1xf32, #tpu.memory_space<vmem>>, vector<1x1x4x1xf32>
    %5 = vector.shape_cast %4 : vector<1x1x4x1xf32> to vector<4x1xf32>
    %6 = vector.shape_cast %3 : vector<4x1xf32> to vector<1x1x4x1xf32>
    tpu.vector_store %arg4[%c0_2, %c0_3, %c0_4, %c0_5], %6 {strides = array<i32>} : memref<1x1x4x1xf32, #tpu.memory_space<vmem>>, vector<1x1x4x1xf32>,
    %7 = arith.mulf %1, %1 : vector<4x256xf32>
    %cst_6 = arith.constant dense<0.000000e+00> : vector<4xf32>
    %8 = vector.multi_reduction <add>, %7, %cst_6 [1] : vector<4x256xf32> to vector<4xf32>
    %9 = vector.shape_cast %8 : vector<4xf32> to vector<4x1xf32>
    %c0_7 = arith.constant 0 : index
    %c0_8 = arith.constant 0 : index
    %c0_9 = arith.constant 0 : index
    %c0_10 = arith.constant 0 : index
    %10 = vector.load %arg6[%c0_7, %c0_8, %c0_9, %c0_10] : memref<1x1x4x1xf32, #tpu.memory_space<vmem>>, vector<1x1x4x1xf32>
    %11 = vector.shape_cast %10 : vector<1x1x4x1xf32> to vector<4x1xf32>
    %12 = vector.shape_cast %9 : vector<4x1xf32> to vector<1x1x4x1xf32>
    tpu.vector_store %arg6[%c0_7, %c0_8, %c0_9, %c0_10], %12 {strides = array<i32>} : memref<1x1x4x1xf32, #tpu.memory_space<vmem>>, vector<1x1x4x1xf32>,
    %c0_11 = arith.constant 0 : index
    %c0_12 = arith.constant 0 : index
    %c0_13 = arith.constant 0 : index
    %13 = vector.load %arg3[%c0_11, %c0_12, %c0_13] : memref<1x4x256xf32, #tpu.memory_space<vmem>>, vector<1x4x256xf32>
    %14 = vector.shape_cast %13 : vector<1x4x256xf32> to vector<4x256xf32>
    %cst_14 = arith.constant dense<0.000000e+00> : vector<4xf32>
    %15 = vector.multi_reduction <add>, %14, %cst_14 [1] : vector<4x256xf32> to vector<4xf32>
    %16 = vector.shape_cast %15 : vector<4xf32> to vector<4x1xf32>
    %c0_15 = arith.constant 0 : index
    %c0_16 = arith.constant 0 : index
    %c0_17 = arith.constant 0 : index
    %c0_18 = arith.constant 0 : index
    %17 = vector.load %arg5[%c0_15, %c0_16, %c0_17, %c0_18] : memref<1x1x4x1xf32, #tpu.memory_space<vmem>>, vector<1x1x4x1xf32>
    %18 = vector.shape_cast %17 : vector<1x1x4x1xf32> to vector<4x1xf32>
    %19 = vector.shape_cast %16 : vector<4x1xf32> to vector<1x1x4x1xf32>
    tpu.vector_store %arg5[%c0_15, %c0_16, %c0_17, %c0_18], %19 {strides = array<i32>} : memref<1x1x4x1xf32, #tpu.memory_space<vmem>>, vector<1x1x4x1xf32>,
    %20 = arith.mulf %14, %14 : vector<4x256xf32>
    %cst_19 = arith.constant dense<0.000000e+00> : vector<4xf32>
    %21 = vector.multi_reduction <add>, %20, %cst_19 [1] : vector<4x256xf32> to vector<4xf32>
    %22 = vector.shape_cast %21 : vector<4xf32> to vector<4x1xf32>
    %c0_20 = arith.constant 0 : index
    %c0_21 = arith.constant 0 : index
    %c0_22 = arith.constant 0 : index
    %c0_23 = arith.constant 0 : index
    %23 = vector.load %arg7[%c0_20, %c0_21, %c0_22, %c0_23] : memref<1x1x4x1xf32, #tpu.memory_space<vmem>>, vector<1x1x4x1xf32>
    %24 = vector.shape_cast %23 : vector<1x1x4x1xf32> to vector<4x1xf32>
    %25 = vector.shape_cast %22 : vector<4x1xf32> to vector<1x1x4x1xf32>
    tpu.vector_store %arg7[%c0_20, %c0_21, %c0_22, %c0_23], %25 {strides = array<i32>} : memref<1x1x4x1xf32, #tpu.memory_space<vmem>>, vector<1x1x4x1xf32>,
    return
  }
  func.func @transform_0(%arg0: i32, %arg1: i32) -> (i32, i32, i32) {
    %c0_i32 = arith.constant 0 : i32
    %c0_i32_0 = arith.constant 0 : i32
    return %arg0, %c0_i32, %arg1 : i32, i32, i32
  }
  func.func @transform_1(%arg0: i32, %arg1: i32) -> (i32, i32, i32) {
    %c0_i32 = arith.constant 0 : i32
    %c0_i32_0 = arith.constant 0 : i32
    return %arg0, %c0_i32, %arg1 : i32, i32, i32
  }
  func.func @transform_2(%arg0: i32, %arg1: i32) -> (i32, i32, i32, i32) {
    %c0_i32 = arith.constant 0 : i32
    %c0_i32_0 = arith.constant 0 : i32
    %c0_i32_1 = arith.constant 0 : i32
    return %arg0, %arg1, %c0_i32, %c0_i32_0 : i32, i32, i32, i32
  }
  func.func @transform_3(%arg0: i32, %arg1: i32) -> (i32, i32, i32, i32) {
    %c0_i32 = arith.constant 0 : i32
    %c0_i32_0 = arith.constant 0 : i32
    %c0_i32_1 = arith.constant 0 : i32
    return %arg0, %arg1, %c0_i32, %c0_i32_0 : i32, i32, i32, i32
  }
  func.func @transform_4(%arg0: i32, %arg1: i32) -> (i32, i32, i32, i32) {
    %c0_i32 = arith.constant 0 : i32
    %c0_i32_0 = arith.constant 0 : i32
    %c0_i32_1 = arith.constant 0 : i32
    return %arg0, %arg1, %c0_i32, %c0_i32_0 : i32, i32, i32, i32
  }
  func.func @transform_5(%arg0: i32, %arg1: i32) -> (i32, i32, i32, i32) {
    %c0_i32 = arith.constant 0 : i32
    %c0_i32_0 = arith.constant 0 : i32
    %c0_i32_1 = arith.constant 0 : i32
    return %arg0, %arg1, %c0_i32, %c0_i32_0 : i32, i32, i32, i32
  }
}

</mosaic_0001>

<bundles_post_ra>
// kernel: tpu_custom_call.1
= control target key start
LH: loop header
LB: loop body
LE: loop exit
PB: predicated region body
PF: predicated region fallthrough
CT: control target
= control target key end

     0   :  { %11 = vsyncpa [#allocation3], 0  ;;  %s1061_s0 = inlined_call_operand.hbm [shape: f32[2,4,256], index: 0, kind: input, shape index: {}]   ;;  %s1062_s1 = inlined_call_operand.hbm [shape: f32[2,4,256], index: 1, kind: input, shape index: {}]   ;;  %s1063_s2 = inlined_call_operand.vmem [shape: f32[2,1,4,1], index: 2, kind: output, shape index: {0}]   ;;  %s1064_s3 = inlined_call_operand.vmem [shape: f32[2,1,4,1], index: 3, kind: output, shape index: {1}]   ;;  %s1065_s4 = inlined_call_operand.vmem [shape: f32[2,1,4,1], index: 4, kind: output, shape index: {2}]   ;;  %s1066_s5 = inlined_call_operand.vmem [shape: f32[2,1,4,1], index: 5, kind: output, shape index: {3}]  }
   0x1   :  { %13 = vsyncpa [#allocation3 + $0x1], 0 }
   0x2   :  { %14 = vsyncpa [#allocation5], 0 }
   0x3   :  { %16 = vsyncpa [#allocation5 + $0x1], 0  ;;  %s872_s18 = smov 0   ;;  %s874_s19 = smov 0  }
   0x4   :  { %s876_s20 = smov 0   ;;  %s878_s21 = smov 0  }
   0x5   :  { %s880_s22 = smov 0   ;;  %s882_s23 = smov 0  }
   0x6 LB: > { %s641_s24 = sadd.s32 4294967295, %s838_s23   ;;  %s34_s25 = sadd.s32 1, %s834_s22  ;;  %s838_s23 = sphi %s882_s23, %s22_s23   ;;  %s834_s22 = sphi %s880_s22, %s1080_s22   ;;  %s830_s21 = sphi %s878_s21, %s1079_s21   ;;  %s826_s20 = sphi %s876_s20, %s1078_s20   ;;  %s822_s19 = sphi %s874_s19, %s1077_s19   ;;  %s818_s18 = sphi %s872_s18, %s1076_s18  }
   0x7   : > { %p36_p0 = scmp.ge.s32.totalorder %s34_s25, 2  ;;  %s43_s26 = sadd.s32 1, %s826_s20 }
   0x8   : > { %p50_p1 = scmp.ne.s32.totalorder %s826_s20, %s822_s19  ;;  %p51_p2 = scmp.eq.s32.totalorder %s838_s23, 0 }
   0x9   : > { %s1082_s25 = smov (%p36_p0, %s34_s25), 0  ;;  %p56_p4 = scmp.ne.s32.totalorder %s822_s19, %s818_s18 }
   0xa   : > { %p908_p3 = por %p51_p2, %p50_p1  ;;  %s38_s28 = ssub.s32 %s834_s22, %s1082_s25 }
   0xb   : > { %p57_p5 = scmp.eq.s32.totalorder %s641_s24, 0  ;;  %p41_p6 = scmp.eq.s32.totalorder %s38_s28, 0 }
   0xc   : > { %p673_p8 = scmp.lt.s32.totalorder %s838_s23, 2  ;;  %s924_s6 = sand.u32 1, %s826_s20  }
   0xd   : > { %p915_p7 = por %p57_p5, %p56_p4  ;;  %s660_s7 = sshll.u32 %s834_s22, 7 }
   0xe   : > { %s921_s30 = scalar_select %p41_p6, %s826_s20, %s43_s26  }
   0xf   : > { %s1069_s29 = scalar_select %p915_p7, 1, 0 }
  0x10   : > { %s645_s8 = sshll.u32 %s924_s6, 3  ;;  %s933_s11 = scalar_lea.hbm %s1061_s0, %s660_s7 }
  0x11   : > { %s224_s12 = scalar_lea.vmem [#allocation2], %s645_s8  ;;  %p939_p9 = pnand %p673_p8, %p908_p3 }
  0x12   : > { %s234_s13 = sshll.u32 %s224_s12, 4  ;;  %s221_s15 = scalar_lea.sflag [#allocation3], %s924_s6  ;;  %s943_s13 = int_to_ptr.vmem [resolvable:$true] %s234_s13 }
  0x13   : > { %s724_s16 = scalar_lea.hbm %s933_s11, 128  ;;  %p726_p13 = pneg %p939_p9 }
  0x14   : > { %p725_p12 = scmp.ne.s32.totalorder %s933_s11, %s724_s16  ;;  %s729_s24 = scalar_lea.hbm %s1061_s0, 256 }
  0x15   : > { %p730_p2 = scmp.lt.u32.totalorder %s933_s11, %s1061_s0  ;;  %p731_p3 = scmp.lt.u32.totalorder %s729_s24, %s724_s16 }
  0x16   : > { %p727_p0 = pnand %p726_p13, %p725_p12  ;;  %p733_p5 = scmp.lt.u32.totalorder %s724_s16, %s933_s11 }
  0x17   : > { %p732_p4 = por %p731_p3, %p730_p2 }
  0x18   : > { %p728_p1 = pneg %p727_p0 }
  0x19   : > { %p734_p6 = por %p733_p5, %p732_p4 }
  0x1b   : > { %p735_p8 = pnand %p734_p6, %p728_p1 }
  0x1d   : > { %738 = shalt.err (!%p735_p8)
}
  0x1e   : > { %s739_s28 = scalar_lea.vmem %s943_s13, 128  ;;  %s840_s9 = smov [#allocation2]  }
  0x1f   : > { %p740_p12 = scmp.ne.s32.totalorder %s943_s13, %s739_s28  ;;  %s744_s10 = sshll.u32 %s840_s9, 4  ;;  %s745_s10 = int_to_ptr.vmem [resolvable:$false] %s744_s10 }
  0x20   : > { %s746_s12 = scalar_lea.vmem %s745_s10, 256  ;;  %p747_p11 = scmp.lt.s32.totalorder %s943_s13, %s745_s10 }
  0x21   : > { %p742_p0 = pnand %p740_p12, %p726_p13  ;;  %p748_p2 = scmp.lt.s32.totalorder %s746_s12, %s739_s28 }
  0x23   : > { %p743_p10 = pneg %p742_p0  ;;  %p749_p3 = por %p748_p2, %p747_p11 }
  0x25   : > { %p750_p4 = pnand %p749_p3, %p743_p10 }
  0x27   : > { %753 = shalt.err (!%p750_p4)
}
  0x28   : > { %669 = dma.hbm_to_vmem [thread:$0]  (!%p939_p9), %s933_s11, 128, %s943_s13, %s221_s15  }
  0x29   : > { %p1071_p1 = scmp.lt.s32.totalorder %s838_s23, 3  ;;  %p1072_p5 = scmp.ge.s32.totalorder %s838_s23, 1 }
  0x2a   : > { %s986_s24 = scalar_lea.hbm %s1062_s1, %s660_s7  ;;  %s245_s26 = scalar_lea.vmem [#allocation4], %s645_s8 }
  0x2b   : > { %p977_p6 = pnand %p1072_p5, %p1071_p1  ;;  %s255_s27 = sshll.u32 %s245_s26, 4  ;;  %s256_s27 = int_to_ptr.vmem [resolvable:$true] %s255_s27 }
  0x2c   : > { %s242_s11 = scalar_lea.sflag [#allocation5], %s924_s6  ;;  %s754_s13 = scalar_lea.hbm %s986_s24, 128 }
  0x2d   : > { %s1073_s16 = scalar_select %p977_p6, 1, 0 }
  0x2e   : > { %p755_p10 = scmp.ne.s32.totalorder %s986_s24, %s754_s13  ;;  %s759_s7 = scalar_lea.hbm %s1062_s1, 256 }
  0x2f   : > { %p760_p12 = scmp.lt.u32.totalorder %s986_s24, %s1062_s1  ;;  %p761_p0 = scmp.lt.u32.totalorder %s759_s7, %s754_s13 }
  0x30   : > { %p757_p11 = pnand %p755_p10, %p726_p13  ;;  %p763_p3 = scmp.lt.u32.totalorder %s754_s13, %s986_s24 }
  0x31   : > { %p762_p2 = por %p761_p0, %p760_p12 }
  0x32   : > { %p758_p8 = pneg %p757_p11 }
  0x33   : > { %p764_p4 = por %p763_p3, %p762_p2 }
  0x35   : > { %p765_p1 = pnand %p764_p4, %p758_p8 }
  0x37   : > { %768 = shalt.err (!%p765_p1)
}
  0x38   : > { %s769_s6 = scalar_lea.vmem %s256_s27, 128  ;;  %s841_s8 = smov [#allocation4]  }
  0x39   : > { %p770_p5 = scmp.ne.s32.totalorder %s256_s27, %s769_s6  ;;  %s774_s12 = sshll.u32 %s841_s8, 4  ;;  %s775_s12 = int_to_ptr.vmem [resolvable:$false] %s774_s12 }
  0x3a   : > { %s776_s17 = scalar_lea.vmem %s775_s12, 256  ;;  %p777_p7 = scmp.lt.s32.totalorder %s256_s27, %s775_s12 }
  0x3b   : > { %p772_p10 = pnand %p770_p5, %p726_p13  ;;  %p778_p6 = scmp.lt.s32.totalorder %s776_s17, %s769_s6 }
  0x3d   : > { %p773_p11 = pneg %p772_p10  ;;  %p779_p0 = por %p778_p6, %p777_p7 }
  0x3f   : > { %p780_p12 = pnand %p779_p0, %p773_p11 }
  0x41   : > { %783 = shalt.err (!%p780_p12)
}
  0x42   : > { %672 = dma.hbm_to_vmem [thread:$0]  (!%p939_p9), %s986_s24, 128, %s256_s27, %s242_s11  }
  0x43   : > { %p1074_p8 = scmp.ne.s32.totalorder %s1073_s16, 0 }
  0x44   : > { %s266_s18 = sand.u32 (!%p1074_p8), 1, %s822_s19   ;;  %p1075_p13 = scmp.ne.s32.totalorder (!%p1074_p8), %s1069_s29, 0 }
  0x45   : > { %264 = sbr.rel (%p1074_p8) target bundleno = 232 (0xe8), region = 28  ;;  %s652_s26 = sshll.u32 (!%p1074_p8), %s266_s18, 3 }
  0x46   : > { %s267_s13 = scalar_lea.sflag (!%p1074_p8), [#allocation3], %s266_s18  ;;  %s270_s15 = scalar_lea.vmem (!%p1074_p8), [#allocation2], %s652_s26 }
  0x4c   : > { %809 = dma.done.wait (%p1075_p13), %s267_s13, 128  }
  0x4d   : > { %811 = vsyncadd (%p1075_p13), %s267_s13, 4294967168  ;;  %s276_s28 = scalar_lea.sflag [#allocation5], %s266_s18  ;;  %s279_s7 = scalar_lea.vmem [#allocation4], %s652_s26 }
  0x4e   : > { %813 = dma.done.wait (%p1075_p13), %s276_s28, 128  }
  0x4f   : > { %815 = vsyncadd (%p1075_p13), %s276_s28, 4294967168  ;;  %vm368_vm0 = vcmask 1043456   ;;  %v386_v0 = vld [vmem:[%s279_s7] sm:$0xff]  ;;  %v364_v1 = vld [vmem:[%s270_s15] sm:$0xff]  ;;  %p336_p7 = scmp.lt.s32.totalorder %s830_s21, 1  ;;  %vm374_vm1 = vcmask 3072  }
  0x50   : > { %v388_v2 = vcombine.high %v386_v0, %v386_v0  ;;  %v390_v3 = vsel %vm368_vm0, %v386_v0, 0.0  ;;  %v366_v4 = vcombine.high %v364_v1, %v364_v1  ;;  %v369_v5 = vsel %vm368_vm0, %v364_v1, 0.0 }
  0x51   : > { %v396_v6 = vmul.f32 %v386_v0, %v386_v0  ;;  %v376_v7 = vmul.f32 %v364_v1, %v364_v1  ;;  %s1084_s21 = smov (!%p336_p7, %s830_s21), 1 }
  0x52   : > { %v391_v8 = vsel %vm368_vm0, %v388_v2, 0.0  ;;  %v370_v9 = vsel %vm368_vm0, %v366_v4, 0.0  ;;  %s654_s29 = sshll.u32 %s1084_s21, 2 }
  0x53   : > { %v392_v10 = vadd.f32 %v391_v8, %v390_v3  ;;  %v371_v11 = vadd.f32 %v370_v9, %v369_v5  ;;  %v398_v12 = vcombine.high %v396_v6, %v396_v6  ;;  %v400_v13 = vsel %vm368_vm0, %v396_v6, 0.0  ;;  %s349_s24 = scalar_lea.vmem %s1064_s3, %s654_s29  ;;  %s342_s9 = scalar_lea.vmem %s1063_s2, %s654_s29 }
  0x54   : > { %v378_v14 = vcombine.high %v376_v7, %v376_v7  ;;  %v380_v15 = vsel %vm368_vm0, %v376_v7, 0.0  ;;  %s363_s8 = scalar_lea.vmem %s1066_s5, %s654_s29  ;;  %s356_s21 = scalar_lea.vmem %s1065_s4, %s654_s29 }
  0x55   : > { %393 = vadd.xlane.f32.xlu1 %v392_v10  ;;  %372 = vadd.xlane.f32.xlu0 %v371_v11  ;;  %v401_v16 = vsel %vm368_vm0, %v398_v12, 0.0 }
  0x56   : > { %v402_v17 = vadd.f32 %v401_v16, %v400_v13  ;;  %v381_v18 = vsel %vm368_vm0, %v378_v14, 0.0 }
  0x57   : > { %v382_v19 = vadd.f32 %v381_v18, %v380_v15 }
  0x59   : > { %403 = vadd.xlane.f32.xlu1 %v402_v17  ;;  %383 = vadd.xlane.f32.xlu0 %v382_v19 }
  0xe2   : > { %v394_v20 = vpop.xlane.xlu1 %393  ;;  %v373_v21 = vpop.xlane.xlu0 %372 }
  0xe3   : > { %395 = vst.msk [vmem:[%s349_s24] sm:$0xf] %vm374_vm1, %v394_v20  ;;  %375 = vst.msk [vmem:[%s342_s9] sm:$0xf] %vm374_vm1, %v373_v21 }
  0xe6   : > { %v404_v22 = vpop.xlane.xlu1 %403  ;;  %v384_v23 = vpop.xlane.xlu0 %383 }
  0xe7   : > { %405 = vst.msk [vmem:[%s363_s8] sm:$0xf] %vm374_vm1, %v404_v22  ;;  %385 = vst.msk [vmem:[%s356_s21] sm:$0xf] %vm374_vm1, %v384_v23 }
  0xe8 PF: > { %s22_s23 = sadd.s32 1, %s838_s23   ;;  %s1076_s18 = smov %s822_s19 }
  0xe9   : > { %p19_p9 = scmp.ge.s32.totalorder %s22_s23, 4   ;;  %s1077_s19 = smov %s826_s20 }
  0xea   : > { %s1078_s20 = smov %s921_s30  ;;  %s1079_s21 = smov %s834_s22 }
  0xeb   : > { %s1080_s22 = smov %s1082_s25  ;;  %21 = sbr.rel (!%p19_p9) target bundleno = 6 (0x6), region = 117 }
  0xf2   :  { %491 = vsyncpa [#allocation3], 1 }
  0xf3   :  { %493 = vsyncpa [#allocation3 + $0x1], 1 }
  0xf4   :  { %494 = vsyncpa [#allocation5], 1 }
  0xf5   :  { %496 = vsyncpa [#allocation5 + $0x1], 1 }

</bundles_post_ra>
